<compile_context>
chip_gen: v7x
topology: tpu7x:2x2x1
jax: 0.10.0
libtpu: 0.0.40
codegen_flags: <defaults>
</compile_context>

<pallas_src>
import functools

import jax
import jax.numpy as jnp
from jax import lax
from jax.experimental import pallas as pl
from jax.experimental.pallas import tpu as pltpu


def gru_kernel(x_ref, wih_ref, whh_ref, bx_ref, bhn_ref, out_ref, *, T, H):
    """Whole-sequence GRU in a single kernel invocation.

    Refs:
      x_ref  : (T*Bp, D)  all timesteps, batch padded to Bp (sublane multiple)
      wih_ref: (D, 3H)    fused input weights,  gate order [r | z | n]
      whh_ref: (H, 3H)    fused hidden weights, gate order [r | z | n]
      bx_ref : (1, 3H)    fused bias for the input projection
                          ([b_ir+b_hr | b_iz+b_hz | b_in])
      bhn_ref: (1, H)     b_hn (applied inside r * (...))
      out_ref: (Bp, T*H)  hidden state at every timestep, (B,T,H) layout flat
    """
    Bp = out_ref.shape[0]

    # (1) Input projection for ALL timesteps: one big MXU GEMM, hoisted out of
    #     the serial dependency chain.
    xproj = (jnp.dot(x_ref[...], wih_ref[...],
                     preferred_element_type=jnp.float32)
             + bx_ref[...])                                        # (T*Bp, 3H)

    whh = whh_ref[...]
    # Hoisted: one broadcast for all T steps (JAX does not CSE broadcasts).
    bhn_b = jnp.broadcast_to(bhn_ref[...], (Bp, H))

    hs = []

    # (2) t = 0: h0 == 0 -> hidden projection is identically zero; skip the
    #     matmul entirely and compute the gates from xproj alone.
    xp = xproj[0:Bp, :]                                            # (Bp, 3H)
    r = jax.nn.sigmoid(xp[:, 0 * H:1 * H])
    z = jax.nn.sigmoid(xp[:, 1 * H:2 * H])
    n = jnp.tanh(xp[:, 2 * H:3 * H] + r * bhn_b)
    h = n - z * n                                                  # (1-z)*n, h_prev = 0
    hs.append(h)

    # (3) t >= 1: serial recurrence, one fused (Bp,H)x(H,3H) matmul per step.
    #     T is small & static -> unrolled at trace time, all slices static.
    for t in range(1, T):
        xp = xproj[t * Bp:(t + 1) * Bp, :]                         # (Bp, 3H)
        hp = jnp.dot(h, whh, preferred_element_type=jnp.float32)   # (Bp, 3H)
        r = jax.nn.sigmoid(xp[:, 0 * H:1 * H] + hp[:, 0 * H:1 * H])
        z = jax.nn.sigmoid(xp[:, 1 * H:2 * H] + hp[:, 1 * H:2 * H])
        n = jnp.tanh(xp[:, 2 * H:3 * H] + r * (hp[:, 2 * H:3 * H] + bhn_b))
        h = n + z * (h - n)                # == (1-z)*n + z*h, one fewer VALU op
        hs.append(h)

    # (4) One unmasked, 256-lane-aligned slab store instead of T masked
    #     32-lane partial stores inside the recurrence body.
    out_ref[...] = jnp.concatenate(hs, axis=1)                     # (Bp, T*H)


def prepare_params(w_ih, w_hh, b_ih, b_hh):
    """One-time parameter preparation (do NOT call per forward pass).

    w_ih : (3, D, H)  gates [r, z, n]  (per-gate transposed vs. PyTorch)
    w_hh : (3, H, H)
    b_ih : (3, 1, H)
    b_hh : (3, 1, H)
    """
    wih_f = jnp.concatenate([w_ih[0], w_ih[1], w_ih[2]], axis=1)   # (D, 3H)
    whh_f = jnp.concatenate([w_hh[0], w_hh[1], w_hh[2]], axis=1)   # (H, 3H)
    # Fold r/z biases (b_ih + b_hh); keep b_hn separate (inside r * (...)).
    b_x = jnp.concatenate([b_ih[0] + b_hh[0],
                           b_ih[1] + b_hh[1],
                           b_ih[2]], axis=1)                       # (1, 3H)
    b_hn = b_hh[2]                                                 # (1, H)
    return wih_f, whh_f, b_x, b_hn


def encoder_forward(x, params):
    """Pallas implementation of Encoder.forward.

    x      : (T, B, D) float32
    params : output of prepare_params()
    returns (outputs (B, T, H), hidden (1, B, H))
    """
    wih_f, whh_f, b_x, b_hn = params
    T, B, D = x.shape
    H = whh_f.shape[0]
    Bp = ((B + 7) // 8) * 8                     # pad batch to full sublanes

    # Pad batch to Bp and flatten time into the sublane axis (row-major, free).
    x_p = jnp.pad(x, ((0, 0), (0, Bp - B), (0, 0)))
    x2d = x_p.reshape(T * Bp, D)

    kernel = functools.partial(gru_kernel, T=T, H=H)

    out = pl.pallas_call(
        kernel,
        out_shape=jax.ShapeDtypeStruct((Bp, T * H), jnp.float32),
        grid_spec=pltpu.PrefetchScalarGridSpec(
            num_scalar_prefetch=0,
            grid=(1,),
            in_specs=[
                pl.BlockSpec((T * Bp, D), lambda i: (0, 0)),
                pl.BlockSpec((D, 3 * H), lambda i: (0, 0)),
                pl.BlockSpec((H, 3 * H), lambda i: (0, 0)),
                pl.BlockSpec((1, 3 * H), lambda i: (0, 0)),
                pl.BlockSpec((1, H), lambda i: (0, 0)),
            ],
            out_specs=pl.BlockSpec((Bp, T * H), lambda i: (0, 0)),
        ),
        compiler_params=pltpu.CompilerParams(
            dimension_semantics=("arbitrary",)),   # sequential recurrence
    )(x2d, wih_f, whh_f, b_x, b_hn)

    outputs = out[:B].reshape(B, T, H)      # pure reshape, no transpose
    hidden = outputs[:, -1, :][None]        # (1, B, H) final hidden
    return outputs, hidden


def encoder_forward_ref(x, w_ih, w_hh, b_ih, b_hh):
    """Pure-JAX reference (lax.scan) for correctness check."""
    T, B, D = x.shape
    H = w_hh.shape[-1]

    def step(h, x_t):
        r = jax.nn.sigmoid(x_t @ w_ih[0] + b_ih[0] + h @ w_hh[0] + b_hh[0])
        z = jax.nn.sigmoid(x_t @ w_ih[1] + b_ih[1] + h @ w_hh[1] + b_hh[1])
        n = jnp.tanh(x_t @ w_ih[2] + b_ih[2] + r * (h @ w_hh[2] + b_hh[2]))
        h_new = (1.0 - z) * n + z * h
        return h_new, h_new

    h0 = jnp.zeros((B, H), jnp.float32)
    h_fin, outs = lax.scan(step, h0, x)
    return jnp.transpose(outs, (1, 0, 2)), h_fin[None]


if __name__ == "__main__":
    T, B, D, H = 8, 4, 16, 32   # seq, batch, input_dim, hid_dim

    key = jax.random.PRNGKey(0)
    kx, kwi, kwh, kbi, kbh = jax.random.split(key, 5)

    # Deterministic parameters, mirroring nn.GRU's U(-1/sqrt(H), 1/sqrt(H)) init.
    bound = 1.0 / jnp.sqrt(jnp.float32(H))
    x = jax.random.normal(kx, (T, B, D), jnp.float32)
    # PyTorch stores weight_ih_l0 as (3H, D); we keep (3, D, H) = transposed per gate.
    w_ih = jax.random.uniform(kwi, (3, D, H), jnp.float32, -bound, bound)
    w_hh = jax.random.uniform(kwh, (3, H, H), jnp.float32, -bound, bound)
    b_ih = jax.random.uniform(kbi, (3, 1, H), jnp.float32, -bound, bound)
    b_hh = jax.random.uniform(kbh, (3, 1, H), jnp.float32, -bound, bound)

    # One-time parameter preparation (hoisted out of the per-call path).
    params = jax.block_until_ready(prepare_params(w_ih, w_hh, b_ih, b_hh))

    outputs, hidden = encoder_forward(x, params)
    outputs, hidden = jax.block_until_ready((outputs, hidden))

    ref_out, ref_hid = encoder_forward_ref(x, w_ih, w_hh, b_ih, b_hh)
    assert outputs.shape == (B, T, H) and hidden.shape == (1, B, H)
    assert jnp.allclose(outputs, ref_out, atol=1e-5, rtol=1e-5)
    assert jnp.allclose(hidden, ref_hid, atol=1e-5, rtol=1e-5)

    print("KERNEL_OK")
</pallas_src>

<mosaic_0001>
module attributes {stable_mosaic.version = 11 : i64} {
  func.func @gru_kernel(%arg0: i32, %arg1: memref<64x16xf32, #tpu.memory_space<vmem>>, %arg2: memref<16x96xf32, #tpu.memory_space<vmem>>, %arg3: memref<32x96xf32, #tpu.memory_space<vmem>>, %arg4: memref<1x96xf32, #tpu.memory_space<vmem>>, %arg5: memref<1x32xf32, #tpu.memory_space<vmem>>, %arg6: memref<8x256xf32, #tpu.memory_space<vmem>>) attributes {dimension_semantics = [#tpu.dimension_semantics<arbitrary>], iteration_bounds = array<i64: 1>, scalar_prefetch = 0 : i64, scratch_operands = 0 : i64, tpu.core_type = #tpu.core_type<tc>, window_params = [{pipeline_mode = #tpu.pipeline_mode<synchronous>, transform_indices = @transform_0, window_bounds = array<i64: 64, 16>}, {pipeline_mode = #tpu.pipeline_mode<synchronous>, transform_indices = @transform_1, window_bounds = array<i64: 16, 96>}, {pipeline_mode = #tpu.pipeline_mode<synchronous>, transform_indices = @transform_2, window_bounds = array<i64: 32, 96>}, {pipeline_mode = #tpu.pipeline_mode<synchronous>, transform_indices = @transform_3, window_bounds = array<i64: 1, 96>}, {pipeline_mode = #tpu.pipeline_mode<synchronous>, transform_indices = @transform_4, window_bounds = array<i64: 1, 32>}, {pipeline_mode = #tpu.pipeline_mode<synchronous>, transform_indices = @transform_5, window_bounds = array<i64: 8, 256>}]} {
    %c0 = arith.constant 0 : index
    %c0_0 = arith.constant 0 : index
    %0 = vector.load %arg1[%c0, %c0_0] : memref<64x16xf32, #tpu.memory_space<vmem>>, vector<64x16xf32>
    %c0_1 = arith.constant 0 : index
    %c0_2 = arith.constant 0 : index
    %1 = vector.load %arg2[%c0_1, %c0_2] : memref<16x96xf32, #tpu.memory_space<vmem>>, vector<16x96xf32>
    %cst = arith.constant dense<0.000000e+00> : vector<64x96xf32>
    %2 = tpu.matmul %0, %1, %cst {dimension_numbers = #tpu.dot_dimension_numbers<[1], [0], [0], [1], [0, 0, 1, 1], [], []>} : vector<64x16xf32>, vector<16x96xf32>, vector<64x96xf32> -> vector<64x96xf32>
    %c0_3 = arith.constant 0 : index
    %c0_4 = arith.constant 0 : index
    %3 = vector.load %arg4[%c0_3, %c0_4] : memref<1x96xf32, #tpu.memory_space<vmem>>, vector<1x96xf32>
    %4 = vector.broadcast %3 : vector<1x96xf32> to vector<64x96xf32>
    %5 = arith.addf %2, %4 : vector<64x96xf32>
    %c0_5 = arith.constant 0 : index
    %c0_6 = arith.constant 0 : index
    %6 = vector.load %arg3[%c0_5, %c0_6] : memref<32x96xf32, #tpu.memory_space<vmem>>, vector<32x96xf32>
    %c0_7 = arith.constant 0 : index
    %c0_8 = arith.constant 0 : index
    %7 = vector.load %arg5[%c0_7, %c0_8] : memref<1x32xf32, #tpu.memory_space<vmem>>, vector<1x32xf32>
    %8 = vector.shape_cast %7 : vector<1x32xf32> to vector<1x32xf32>
    %9 = vector.broadcast %8 : vector<1x32xf32> to vector<8x32xf32>
    %10 = vector.extract_strided_slice %5 {offsets = [0, 0], sizes = [8, 96], strides = [1, 1]} : vector<64x96xf32> to vector<8x96xf32>
    %11 = vector.extract_strided_slice %10 {offsets = [0, 0], sizes = [8, 32], strides = [1, 1]} : vector<8x96xf32> to vector<8x32xf32>
    %12 = arith.negf %11 : vector<8x32xf32>
    %13 = math.exp %12 : vector<8x32xf32>
    %cst_9 = arith.constant 1.000000e+00 : f32
    %14 = vector.broadcast %cst_9 : f32 to vector<8x32xf32>
    %15 = arith.addf %14, %13 : vector<8x32xf32>
    %16 = arith.divf %14, %15 : vector<8x32xf32>
    %17 = vector.extract_strided_slice %10 {offsets = [0, 32], sizes = [8, 32], strides = [1, 1]} : vector<8x96xf32> to vector<8x32xf32>
    %18 = arith.negf %17 : vector<8x32xf32>
    %19 = math.exp %18 : vector<8x32xf32>
    %cst_10 = arith.constant 1.000000e+00 : f32
    %20 = vector.broadcast %cst_10 : f32 to vector<8x32xf32>
    %21 = arith.addf %20, %19 : vector<8x32xf32>
    %22 = arith.divf %20, %21 : vector<8x32xf32>
    %23 = vector.extract_strided_slice %10 {offsets = [0, 64], sizes = [8, 32], strides = [1, 1]} : vector<8x96xf32> to vector<8x32xf32>
    %24 = arith.mulf %16, %9 : vector<8x32xf32>
    %25 = arith.addf %23, %24 : vector<8x32xf32>
    %26 = math.tanh %25 : vector<8x32xf32>
    %27 = arith.mulf %22, %26 : vector<8x32xf32>
    %28 = arith.subf %26, %27 : vector<8x32xf32>
    %29 = vector.extract_strided_slice %5 {offsets = [8, 0], sizes = [8, 96], strides = [1, 1]} : vector<64x96xf32> to vector<8x96xf32>
    %cst_11 = arith.constant dense<0.000000e+00> : vector<8x96xf32>
    %30 = tpu.matmul %28, %6, %cst_11 {dimension_numbers = #tpu.dot_dimension_numbers<[1], [0], [0], [1], [0, 0, 1, 1], [], []>} : vector<8x32xf32>, vector<32x96xf32>, vector<8x96xf32> -> vector<8x96xf32>
    %31 = vector.extract_strided_slice %29 {offsets = [0, 0], sizes = [8, 32], strides = [1, 1]} : vector<8x96xf32> to vector<8x32xf32>
    %32 = vector.extract_strided_slice %30 {offsets = [0, 0], sizes = [8, 32], strides = [1, 1]} : vector<8x96xf32> to vector<8x32xf32>
    %33 = arith.addf %31, %32 : vector<8x32xf32>
    %34 = arith.negf %33 : vector<8x32xf32>
    %35 = math.exp %34 : vector<8x32xf32>
    %cst_12 = arith.constant 1.000000e+00 : f32
    %36 = vector.broadcast %cst_12 : f32 to vector<8x32xf32>
    %37 = arith.addf %36, %35 : vector<8x32xf32>
    %38 = arith.divf %36, %37 : vector<8x32xf32>
    %39 = vector.extract_strided_slice %29 {offsets = [0, 32], sizes = [8, 32], strides = [1, 1]} : vector<8x96xf32> to vector<8x32xf32>
    %40 = vector.extract_strided_slice %30 {offsets = [0, 32], sizes = [8, 32], strides = [1, 1]} : vector<8x96xf32> to vector<8x32xf32>
    %41 = arith.addf %39, %40 : vector<8x32xf32>
    %42 = arith.negf %41 : vector<8x32xf32>
    %43 = math.exp %42 : vector<8x32xf32>
    %cst_13 = arith.constant 1.000000e+00 : f32
    %44 = vector.broadcast %cst_13 : f32 to vector<8x32xf32>
    %45 = arith.addf %44, %43 : vector<8x32xf32>
    %46 = arith.divf %44, %45 : vector<8x32xf32>
    %47 = vector.extract_strided_slice %29 {offsets = [0, 64], sizes = [8, 32], strides = [1, 1]} : vector<8x96xf32> to vector<8x32xf32>
    %48 = vector.extract_strided_slice %30 {offsets = [0, 64], sizes = [8, 32], strides = [1, 1]} : vector<8x96xf32> to vector<8x32xf32>
    %49 = arith.addf %48, %9 : vector<8x32xf32>
    %50 = arith.mulf %38, %49 : vector<8x32xf32>
    %51 = arith.addf %47, %50 : vector<8x32xf32>
    %52 = math.tanh %51 : vector<8x32xf32>
    %53 = arith.subf %28, %52 : vector<8x32xf32>
    %54 = arith.mulf %46, %53 : vector<8x32xf32>
    %55 = arith.addf %52, %54 : vector<8x32xf32>
    %56 = vector.extract_strided_slice %5 {offsets = [16, 0], sizes = [8, 96], strides = [1, 1]} : vector<64x96xf32> to vector<8x96xf32>
    %cst_14 = arith.constant dense<0.000000e+00> : vector<8x96xf32>
    %57 = tpu.matmul %55, %6, %cst_14 {dimension_numbers = #tpu.dot_dimension_numbers<[1], [0], [0], [1], [0, 0, 1, 1], [], []>} : vector<8x32xf32>, vector<32x96xf32>, vector<8x96xf32> -> vector<8x96xf32>
    %58 = vector.extract_strided_slice %56 {offsets = [0, 0], sizes = [8, 32], strides = [1, 1]} : vector<8x96xf32> to vector<8x32xf32>
    %59 = vector.extract_strided_slice %57 {offsets = [0, 0], sizes = [8, 32], strides = [1, 1]} : vector<8x96xf32> to vector<8x32xf32>
    %60 = arith.addf %58, %59 : vector<8x32xf32>
    %61 = arith.negf %60 : vector<8x32xf32>
    %62 = math.exp %61 : vector<8x32xf32>
    %cst_15 = arith.constant 1.000000e+00 : f32
    %63 = vector.broadcast %cst_15 : f32 to vector<8x32xf32>
    %64 = arith.addf %63, %62 : vector<8x32xf32>
    %65 = arith.divf %63, %64 : vector<8x32xf32>
    %66 = vector.extract_strided_slice %56 {offsets = [0, 32], sizes = [8, 32], strides = [1, 1]} : vector<8x96xf32> to vector<8x32xf32>
    %67 = vector.extract_strided_slice %57 {offsets = [0, 32], sizes = [8, 32], strides = [1, 1]} : vector<8x96xf32> to vector<8x32xf32>
    %68 = arith.addf %66, %67 : vector<8x32xf32>
    %69 = arith.negf %68 : vector<8x32xf32>
    %70 = math.exp %69 : vector<8x32xf32>
    %cst_16 = arith.constant 1.000000e+00 : f32
    %71 = vector.broadcast %cst_16 : f32 to vector<8x32xf32>
    %72 = arith.addf %71, %70 : vector<8x32xf32>
    %73 = arith.divf %71, %72 : vector<8x32xf32>
    %74 = vector.extract_strided_slice %56 {offsets = [0, 64], sizes = [8, 32], strides = [1, 1]} : vector<8x96xf32> to vector<8x32xf32>
    %75 = vector.extract_strided_slice %57 {offsets = [0, 64], sizes = [8, 32], strides = [1, 1]} : vector<8x96xf32> to vector<8x32xf32>
    %76 = arith.addf %75, %9 : vector<8x32xf32>
    %77 = arith.mulf %65, %76 : vector<8x32xf32>
    %78 = arith.addf %74, %77 : vector<8x32xf32>
    %79 = math.tanh %78 : vector<8x32xf32>
    %80 = arith.subf %55, %79 : vector<8x32xf32>
    %81 = arith.mulf %73, %80 : vector<8x32xf32>
    %82 = arith.addf %79, %81 : vector<8x32xf32>
    %83 = vector.extract_strided_slice %5 {offsets = [24, 0], sizes = [8, 96], strides = [1, 1]} : vector<64x96xf32> to vector<8x96xf32>
    %cst_17 = arith.constant dense<0.000000e+00> : vector<8x96xf32>
    %84 = tpu.matmul %82, %6, %cst_17 {dimension_numbers = #tpu.dot_dimension_numbers<[1], [0], [0], [1], [0, 0, 1, 1], [], []>} : vector<8x32xf32>, vector<32x96xf32>, vector<8x96xf32> -> vector<8x96xf32>
    %85 = vector.extract_strided_slice %83 {offsets = [0, 0], sizes = [8, 32], strides = [1, 1]} : vector<8x96xf32> to vector<8x32xf32>
    %86 = vector.extract_strided_slice %84 {offsets = [0, 0], sizes = [8, 32], strides = [1, 1]} : vector<8x96xf32> to vector<8x32xf32>
    %87 = arith.addf %85, %86 : vector<8x32xf32>
    %88 = arith.negf %87 : vector<8x32xf32>
    %89 = math.exp %88 : vector<8x32xf32>
    %cst_18 = arith.constant 1.000000e+00 : f32
    %90 = vector.broadcast %cst_18 : f32 to vector<8x32xf32>
    %91 = arith.addf %90, %89 : vector<8x32xf32>
    %92 = arith.divf %90, %91 : vector<8x32xf32>
    %93 = vector.extract_strided_slice %83 {offsets = [0, 32], sizes = [8, 32], strides = [1, 1]} : vector<8x96xf32> to vector<8x32xf32>
    %94 = vector.extract_strided_slice %84 {offsets = [0, 32], sizes = [8, 32], strides = [1, 1]} : vector<8x96xf32> to vector<8x32xf32>
    %95 = arith.addf %93, %94 : vector<8x32xf32>
    %96 = arith.negf %95 : vector<8x32xf32>
    %97 = math.exp %96 : vector<8x32xf32>
    %cst_19 = arith.constant 1.000000e+00 : f32
    %98 = vector.broadcast %cst_19 : f32 to vector<8x32xf32>
    %99 = arith.addf %98, %97 : vector<8x32xf32>
    %100 = arith.divf %98, %99 : vector<8x32xf32>
    %101 = vector.extract_strided_slice %83 {offsets = [0, 64], sizes = [8, 32], strides = [1, 1]} : vector<8x96xf32> to vector<8x32xf32>
    %102 = vector.extract_strided_slice %84 {offsets = [0, 64], sizes = [8, 32], strides = [1, 1]} : vector<8x96xf32> to vector<8x32xf32>
    %103 = arith.addf %102, %9 : vector<8x32xf32>
    %104 = arith.mulf %92, %103 : vector<8x32xf32>
    %105 = arith.addf %101, %104 : vector<8x32xf32>
    %106 = math.tanh %105 : vector<8x32xf32>
    %107 = arith.subf %82, %106 : vector<8x32xf32>
    %108 = arith.mulf %100, %107 : vector<8x32xf32>
    %109 = arith.addf %106, %108 : vector<8x32xf32>
    %110 = vector.extract_strided_slice %5 {offsets = [32, 0], sizes = [8, 96], strides = [1, 1]} : vector<64x96xf32> to vector<8x96xf32>
    %cst_20 = arith.constant dense<0.000000e+00> : vector<8x96xf32>
    %111 = tpu.matmul %109, %6, %cst_20 {dimension_numbers = #tpu.dot_dimension_numbers<[1], [0], [0], [1], [0, 0, 1, 1], [], []>} : vector<8x32xf32>, vector<32x96xf32>, vector<8x96xf32> -> vector<8x96xf32>
    %112 = vector.extract_strided_slice %110 {offsets = [0, 0], sizes = [8, 32], strides = [1, 1]} : vector<8x96xf32> to vector<8x32xf32>
    %113 = vector.extract_strided_slice %111 {offsets = [0, 0], sizes = [8, 32], strides = [1, 1]} : vector<8x96xf32> to vector<8x32xf32>
    %114 = arith.addf %112, %113 : vector<8x32xf32>
    %115 = arith.negf %114 : vector<8x32xf32>
    %116 = math.exp %115 : vector<8x32xf32>
    %cst_21 = arith.constant 1.000000e+00 : f32
    %117 = vector.broadcast %cst_21 : f32 to vector<8x32xf32>
    %118 = arith.addf %117, %116 : vector<8x32xf32>
    %119 = arith.divf %117, %118 : vector<8x32xf32>
    %120 = vector.extract_strided_slice %110 {offsets = [0, 32], sizes = [8, 32], strides = [1, 1]} : vector<8x96xf32> to vector<8x32xf32>
    %121 = vector.extract_strided_slice %111 {offsets = [0, 32], sizes = [8, 32], strides = [1, 1]} : vector<8x96xf32> to vector<8x32xf32>
    %122 = arith.addf %120, %121 : vector<8x32xf32>
    %123 = arith.negf %122 : vector<8x32xf32>
    %124 = math.exp %123 : vector<8x32xf32>
    %cst_22 = arith.constant 1.000000e+00 : f32
    %125 = vector.broadcast %cst_22 : f32 to vector<8x32xf32>
    %126 = arith.addf %125, %124 : vector<8x32xf32>
    %127 = arith.divf %125, %126 : vector<8x32xf32>
    %128 = vector.extract_strided_slice %110 {offsets = [0, 64], sizes = [8, 32], strides = [1, 1]} : vector<8x96xf32> to vector<8x32xf32>
    %129 = vector.extract_strided_slice %111 {offsets = [0, 64], sizes = [8, 32], strides = [1, 1]} : vector<8x96xf32> to vector<8x32xf32>
    %130 = arith.addf %129, %9 : vector<8x32xf32>
    %131 = arith.mulf %119, %130 : vector<8x32xf32>
    %132 = arith.addf %128, %131 : vector<8x32xf32>
    %133 = math.tanh %132 : vector<8x32xf32>
    %134 = arith.subf %109, %133 : vector<8x32xf32>
    %135 = arith.mulf %127, %134 : vector<8x32xf32>
    %136 = arith.addf %133, %135 : vector<8x32xf32>
    %137 = vector.extract_strided_slice %5 {offsets = [40, 0], sizes = [8, 96], strides = [1, 1]} : vector<64x96xf32> to vector<8x96xf32>
    %cst_23 = arith.constant dense<0.000000e+00> : vector<8x96xf32>
    %138 = tpu.matmul %136, %6, %cst_23 {dimension_numbers = #tpu.dot_dimension_numbers<[1], [0], [0], [1], [0, 0, 1, 1], [], []>} : vector<8x32xf32>, vector<32x96xf32>, vector<8x96xf32> -> vector<8x96xf32>
    %139 = vector.extract_strided_slice %137 {offsets = [0, 0], sizes = [8, 32], strides = [1, 1]} : vector<8x96xf32> to vector<8x32xf32>
    %140 = vector.extract_strided_slice %138 {offsets = [0, 0], sizes = [8, 32], strides = [1, 1]} : vector<8x96xf32> to vector<8x32xf32>
    %141 = arith.addf %139, %140 : vector<8x32xf32>
    %142 = arith.negf %141 : vector<8x32xf32>
    %143 = math.exp %142 : vector<8x32xf32>
    %cst_24 = arith.constant 1.000000e+00 : f32
    %144 = vector.broadcast %cst_24 : f32 to vector<8x32xf32>
    %145 = arith.addf %144, %143 : vector<8x32xf32>
    %146 = arith.divf %144, %145 : vector<8x32xf32>
    %147 = vector.extract_strided_slice %137 {offsets = [0, 32], sizes = [8, 32], strides = [1, 1]} : vector<8x96xf32> to vector<8x32xf32>
    %148 = vector.extract_strided_slice %138 {offsets = [0, 32], sizes = [8, 32], strides = [1, 1]} : vector<8x96xf32> to vector<8x32xf32>
    %149 = arith.addf %147, %148 : vector<8x32xf32>
    %150 = arith.negf %149 : vector<8x32xf32>
    %151 = math.exp %150 : vector<8x32xf32>
    %cst_25 = arith.constant 1.000000e+00 : f32
    %152 = vector.broadcast %cst_25 : f32 to vector<8x32xf32>
    %153 = arith.addf %152, %151 : vector<8x32xf32>
    %154 = arith.divf %152, %153 : vector<8x32xf32>
    %155 = vector.extract_strided_slice %137 {offsets = [0, 64], sizes = [8, 32], strides = [1, 1]} : vector<8x96xf32> to vector<8x32xf32>
    %156 = vector.extract_strided_slice %138 {offsets = [0, 64], sizes = [8, 32], strides = [1, 1]} : vector<8x96xf32> to vector<8x32xf32>
    %157 = arith.addf %156, %9 : vector<8x32xf32>
    %158 = arith.mulf %146, %157 : vector<8x32xf32>
    %159 = arith.addf %155, %158 : vector<8x32xf32>
    %160 = math.tanh %159 : vector<8x32xf32>
    %161 = arith.subf %136, %160 : vector<8x32xf32>
    %162 = arith.mulf %154, %161 : vector<8x32xf32>
    %163 = arith.addf %160, %162 : vector<8x32xf32>
    %164 = vector.extract_strided_slice %5 {offsets = [48, 0], sizes = [8, 96], strides = [1, 1]} : vector<64x96xf32> to vector<8x96xf32>
    %cst_26 = arith.constant dense<0.000000e+00> : vector<8x96xf32>
    %165 = tpu.matmul %163, %6, %cst_26 {dimension_numbers = #tpu.dot_dimension_numbers<[1], [0], [0], [1], [0, 0, 1, 1], [], []>} : vector<8x32xf32>, vector<32x96xf32>, vector<8x96xf32> -> vector<8x96xf32>
    %166 = vector.extract_strided_slice %164 {offsets = [0, 0], sizes = [8, 32], strides = [1, 1]} : vector<8x96xf32> to vector<8x32xf32>
    %167 = vector.extract_strided_slice %165 {offsets = [0, 0], sizes = [8, 32], strides = [1, 1]} : vector<8x96xf32> to vector<8x32xf32>
    %168 = arith.addf %166, %167 : vector<8x32xf32>
    %169 = arith.negf %168 : vector<8x32xf32>
    %170 = math.exp %169 : vector<8x32xf32>
    %cst_27 = arith.constant 1.000000e+00 : f32
    %171 = vector.broadcast %cst_27 : f32 to vector<8x32xf32>
    %172 = arith.addf %171, %170 : vector<8x32xf32>
    %173 = arith.divf %171, %172 : vector<8x32xf32>
    %174 = vector.extract_strided_slice %164 {offsets = [0, 32], sizes = [8, 32], strides = [1, 1]} : vector<8x96xf32> to vector<8x32xf32>
    %175 = vector.extract_strided_slice %165 {offsets = [0, 32], sizes = [8, 32], strides = [1, 1]} : vector<8x96xf32> to vector<8x32xf32>
    %176 = arith.addf %174, %175 : vector<8x32xf32>
    %177 = arith.negf %176 : vector<8x32xf32>
    %178 = math.exp %177 : vector<8x32xf32>
    %cst_28 = arith.constant 1.000000e+00 : f32
    %179 = vector.broadcast %cst_28 : f32 to vector<8x32xf32>
    %180 = arith.addf %179, %178 : vector<8x32xf32>
    %181 = arith.divf %179, %180 : vector<8x32xf32>
    %182 = vector.extract_strided_slice %164 {offsets = [0, 64], sizes = [8, 32], strides = [1, 1]} : vector<8x96xf32> to vector<8x32xf32>
    %183 = vector.extract_strided_slice %165 {offsets = [0, 64], sizes = [8, 32], strides = [1, 1]} : vector<8x96xf32> to vector<8x32xf32>
    %184 = arith.addf %183, %9 : vector<8x32xf32>
    %185 = arith.mulf %173, %184 : vector<8x32xf32>
    %186 = arith.addf %182, %185 : vector<8x32xf32>
    %187 = math.tanh %186 : vector<8x32xf32>
    %188 = arith.subf %163, %187 : vector<8x32xf32>
    %189 = arith.mulf %181, %188 : vector<8x32xf32>
    %190 = arith.addf %187, %189 : vector<8x32xf32>
    %191 = vector.extract_strided_slice %5 {offsets = [56, 0], sizes = [8, 96], strides = [1, 1]} : vector<64x96xf32> to vector<8x96xf32>
    %cst_29 = arith.constant dense<0.000000e+00> : vector<8x96xf32>
    %192 = tpu.matmul %190, %6, %cst_29 {dimension_numbers = #tpu.dot_dimension_numbers<[1], [0], [0], [1], [0, 0, 1, 1], [], []>} : vector<8x32xf32>, vector<32x96xf32>, vector<8x96xf32> -> vector<8x96xf32>
    %193 = vector.extract_strided_slice %191 {offsets = [0, 0], sizes = [8, 32], strides = [1, 1]} : vector<8x96xf32> to vector<8x32xf32>
    %194 = vector.extract_strided_slice %192 {offsets = [0, 0], sizes = [8, 32], strides = [1, 1]} : vector<8x96xf32> to vector<8x32xf32>
    %195 = arith.addf %193, %194 : vector<8x32xf32>
    %196 = arith.negf %195 : vector<8x32xf32>
    %197 = math.exp %196 : vector<8x32xf32>
    %cst_30 = arith.constant 1.000000e+00 : f32
    %198 = vector.broadcast %cst_30 : f32 to vector<8x32xf32>
    %199 = arith.addf %198, %197 : vector<8x32xf32>
    %200 = arith.divf %198, %199 : vector<8x32xf32>
    %201 = vector.extract_strided_slice %191 {offsets = [0, 32], sizes = [8, 32], strides = [1, 1]} : vector<8x96xf32> to vector<8x32xf32>
    %202 = vector.extract_strided_slice %192 {offsets = [0, 32], sizes = [8, 32], strides = [1, 1]} : vector<8x96xf32> to vector<8x32xf32>
    %203 = arith.addf %201, %202 : vector<8x32xf32>
    %204 = arith.negf %203 : vector<8x32xf32>
    %205 = math.exp %204 : vector<8x32xf32>
    %cst_31 = arith.constant 1.000000e+00 : f32
    %206 = vector.broadcast %cst_31 : f32 to vector<8x32xf32>
    %207 = arith.addf %206, %205 : vector<8x32xf32>
    %208 = arith.divf %206, %207 : vector<8x32xf32>
    %209 = vector.extract_strided_slice %191 {offsets = [0, 64], sizes = [8, 32], strides = [1, 1]} : vector<8x96xf32> to vector<8x32xf32>
    %210 = vector.extract_strided_slice %192 {offsets = [0, 64], sizes = [8, 32], strides = [1, 1]} : vector<8x96xf32> to vector<8x32xf32>
    %211 = arith.addf %210, %9 : vector<8x32xf32>
    %212 = arith.mulf %200, %211 : vector<8x32xf32>
    %213 = arith.addf %209, %212 : vector<8x32xf32>
    %214 = math.tanh %213 : vector<8x32xf32>
    %215 = arith.subf %190, %214 : vector<8x32xf32>
    %216 = arith.mulf %208, %215 : vector<8x32xf32>
    %217 = arith.addf %214, %216 : vector<8x32xf32>
    %218 = tpu.concatenate %28, %55, %82, %109, %136, %163, %190, %217 in 1 : vector<8x32xf32>, vector<8x32xf32>, vector<8x32xf32>, vector<8x32xf32>, vector<8x32xf32>, vector<8x32xf32>, vector<8x32xf32>, vector<8x32xf32> -> vector<8x256xf32>
    %c0_32 = arith.constant 0 : index
    %c0_33 = arith.constant 0 : index
    %219 = vector.load %arg6[%c0_32, %c0_33] : memref<8x256xf32, #tpu.memory_space<vmem>>, vector<8x256xf32>
    tpu.vector_store %arg6[%c0_32, %c0_33], %218 {strides = array<i32>} : memref<8x256xf32, #tpu.memory_space<vmem>>, vector<8x256xf32>,
    return
  }
  func.func @transform_0(%arg0: i32) -> (i32, i32) {
    %c0_i32 = arith.constant 0 : i32
    %c0_i32_0 = arith.constant 0 : i32
    %c0_i32_1 = arith.constant 0 : i32
    return %c0_i32, %c0_i32_0 : i32, i32
  }
  func.func @transform_1(%arg0: i32) -> (i32, i32) {
    %c0_i32 = arith.constant 0 : i32
    %c0_i32_0 = arith.constant 0 : i32
    %c0_i32_1 = arith.constant 0 : i32
    return %c0_i32, %c0_i32_0 : i32, i32
  }
  func.func @transform_2(%arg0: i32) -> (i32, i32) {
    %c0_i32 = arith.constant 0 : i32
    %c0_i32_0 = arith.constant 0 : i32
    %c0_i32_1 = arith.constant 0 : i32
    return %c0_i32, %c0_i32_0 : i32, i32
  }
  func.func @transform_3(%arg0: i32) -> (i32, i32) {
    %c0_i32 = arith.constant 0 : i32
    %c0_i32_0 = arith.constant 0 : i32
    %c0_i32_1 = arith.constant 0 : i32
    return %c0_i32, %c0_i32_0 : i32, i32
  }
  func.func @transform_4(%arg0: i32) -> (i32, i32) {
    %c0_i32 = arith.constant 0 : i32
    %c0_i32_0 = arith.constant 0 : i32
    %c0_i32_1 = arith.constant 0 : i32
    return %c0_i32, %c0_i32_0 : i32, i32
  }
  func.func @transform_5(%arg0: i32) -> (i32, i32) {
    %c0_i32 = arith.constant 0 : i32
    %c0_i32_0 = arith.constant 0 : i32
    %c0_i32_1 = arith.constant 0 : i32
    return %c0_i32, %c0_i32_0 : i32, i32
  }
}

</mosaic_0001>

<bundles_post_ra>
// kernel: tpu_custom_call.1
= control target key start
LH: loop header
LB: loop body
LE: loop exit
PB: predicated region body
PF: predicated region fallthrough
CT: control target
= control target key end

     0   :  { %vm38_vm0 = vcmask 130048   ;;  %s1524_s0 = inlined_call_operand.vmem [shape: f32[64,16], index: 0, kind: input, shape index: {}]   ;;  %s1525_s1 = inlined_call_operand.vmem [shape: f32[16,96], index: 1, kind: input, shape index: {}]   ;;  %s1526_s2 = inlined_call_operand.vmem [shape: f32[32,96], index: 2, kind: input, shape index: {}]   ;;  %s1527_s3 = inlined_call_operand.vmem [shape: f32[1,96], index: 3, kind: input, shape index: {}]   ;;  %s1528_s4 = inlined_call_operand.vmem [shape: f32[1,32], index: 4, kind: input, shape index: {}]   ;;  %s1529_s5 = inlined_call_operand.hbm [shape: f32[8,256], index: 5, kind: output, shape index: {}]  }
   0x1   :  { %v29_v0 = vld [vmem:[%s1525_s1] sm:$0xff]  ;;  %v30_v1 = vld [vmem:[%s1525_s1 + $0x8] sm:$0xff] }
   0x2   :  { %v21_v2 = vld [vmem:[%s1524_s0] sm:$0xff]  ;;  %v1143_v3 = vpack.c.bf16 %v30_v1, %v29_v0 }
   0x3   :  { %1054 = vmatprep.mubr.msk.f32.mxu0 %vm38_vm0, %v21_v2 }
   0x4   :  { %10 = vsyncpa [#allocation3], 0  ;;  %1144 = vmatprep.subr.bf16.mxu0 %v1143_v3  ;;  %v22_v4 = vld [vmem:[%s1524_s0 + $0x8] sm:$0xff]  ;;  %v1322_v5 = vld [vmem:[%s1527_s3] ss:$0 sm:$0xff]  ;;  %s1268_s29 = smov 64  }
   0x5   :  { %1146 = vmatpush3.bf16.msra.mxu0 %v1143_v3  ;;  %v989_v12 = vld [vmem:[%s1528_s4] ss:$0 sm:$0xff]  ;;  %s1269_s3 = smov 96   ;;  %v169_v19 = vld [vmem:[%s1526_s2 + $0x8] sm:$0xff]  ;;  %v170_v20 = vld [vmem:[%s1526_s2 + $0x10] sm:$0xff]  ;;  %v1270_v21 = vmov 0.0|0.0  }
   0x6   :  { %v168_v18 = vld [vmem:[%s1526_s2] sm:$0xff]  ;;  %1147 = vmatprep.subr.bf16.mxu1 %v1270_v21  ;;  %v171_v23 = vld [vmem:[%s1526_s2 + $0x18] sm:$0xff]  ;;  %vm1271_vm1 = vmmov 0   ;;  %v1272_v24 = vmov 0.0   ;;  %1159 = vmatprep.subr.bf16.mxu0 %v1270_v21  ;;  %s1273_s2 = smov 32   ;;  %vm205_vm2 = vcmask 261120  }
   0x7   :  { %v1341_v22 = vpack.c.bf16 %v169_v19, %v168_v18  ;;  %1074 = vmatprep.mubr.msk.f32.mxu1 %vm1271_vm1, %v1272_v24  ;;  %v1350_v25 = vpack.c.bf16 %v171_v23, %v170_v20  ;;  %v23_v47 = vld [vmem:[%s1524_s0 + $0x10] sm:$0xff]  ;;  %v24_v48 = vld [vmem:[%s1524_s0 + $0x18] sm:$0xff]  ;;  %vm957_vm3 = vcmask 523264   ;;  %vm959_vm4 = vcmask 785408  }
   0x8   :  { %1055 = vmatmul.mubr.msk.f32.vlgmr.msra.gmra.mrb[0].mxu0 %vm38_vm0, %v22_v4 }
   0x9   :  { %1149 = vmatpush3.bf16.msra.mxu1 %v1341_v22  ;;  %1161 = vmatpush3.bf16.msra.mxu0 %v1341_v22 }
   0xa   :  { %1150 = vmatprep.subr.bf16.mxu1 %v1270_v21  ;;  %1162 = vmatprep.subr.bf16.mxu0 %v1270_v21 }
   0xb   :  { %1057 = vmatprep.mubr.msk.f32.mxu0 %vm38_vm0, %v23_v47 }
   0xc   :  { %1058 = vmatmul.mubr.msk.f32.gmra.mrb[2].mxu0 %vm38_vm0, %v24_v48 }
   0xd   :  { %1152 = vmatpush3.bf16.msra.mxu1 %v1350_v25  ;;  %1164 = vmatpush3.bf16.msra.mxu0 %v1350_v25 }
   0xe   :  { %1153 = vmatprep.subr.bf16.mxu1 %v1270_v21  ;;  %1171 = vmatprep.subr.bf16.mxu0 %v1270_v21 }
  0xdb   :  { %v1056_v6 = vpop.f32.mrb[0].mxu0 }
  0xdc   :  { %v129_v7 = vpop.f32.mrb[1].mxu0  ;;  %v135_v35 = vadd.f32 %v1056_v6, %v1322_v5 }
  0xdd   :  { %v130_v8 = vadd.f32 %v1322_v5, %v129_v7 }
  0xdf   :  { %v990_v9 = vmul.f32 -1.442695, %v130_v8  ;;  %v1059_v53 = vpop.f32.mrb[2].mxu0 }
  0xe0   :  { %v139_v54 = vpop.f32.mrb[3].mxu0 }
  0xe1   :  { %1196 = vpow2.f32 %v990_v9  ;;  %v140_v59 = vadd.f32 %v1322_v5, %v139_v54  ;;  %v26_v9 = vld [vmem:[%s1524_s0 + $0x28] sm:$0xff] }
  0xeb   :  { %v1197_v10 = vpop.eup %1196 }
  0xec   :  { %v182_v11 = vadd.f32 1.0, %v1197_v10  ;;  %v27_v10 = vld [vmem:[%s1524_s0 + $0x30] sm:$0xff] }
  0xee   :  { %1198 = vrcp.f32 %v182_v11  ;;  %v28_v11 = vld [vmem:[%s1524_s0 + $0x38] sm:$0xff] }
  0xf8   :  { %v1199_v13 = vpop.eup %1198 }
  0xf9   :  { %v185_v14 = vmul.f32 %v1199_v13, %v989_v12 }
  0xfb   :  { %187 = vrot.lane.b32.xlu0 %v185_v14, %s1268_s29 }
 0x16d   :  { %v188_v15 = vpop.permute.xlu0 %187 }
 0x16e   :  { %v190_v16 = vadd.f32 %v188_v15, %v130_v8  ;;  %v25_v8 = vld [vmem:[%s1524_s0 + $0x20] sm:$0xff]  ;;  %s1274_s0 = smov [#allocation2]  }
 0x16f   :  { %1060 = vmatprep.mubr.msk.f32.mxu0 %vm38_vm0, %v25_v8  ;;  %s972_s24 = sshll.u32 %s1274_s0, 4  ;;  %s973_s24 = int_to_ptr.vmem [resolvable:$true] %s972_s24 }
 0x170   :  { %1200 = vtanh.f32 %v190_v16  ;;  %1061 = vmatmul.mubr.msk.f32.gmra.mrb[4].mxu0 %vm38_vm0, %v26_v9  ;;  %s1244_s25 = scalar_lea.vmem %s973_s24, 256  ;;  %p1249_p1 = scmp.lt.s32.totalorder %s973_s24, %s973_s24 }
 0x171   :  { %1063 = vmatprep.mubr.msk.f32.mxu0 %vm38_vm0, %v27_v10  ;;  %p1245_p0 = scmp.ne.s32.totalorder %s973_s24, %s1244_s25  ;;  %p1250_p2 = scmp.lt.s32.totalorder %s1244_s25, %s1244_s25 }
 0x173   :  { %p1251_p3 = por %p1250_p2, %p1249_p1 }
 0x174   :  { %1064 = vmatmul.mubr.msk.f32.gmra.mrb[6].mxu0 %vm38_vm0, %v28_v11 }
 0x175   :  { %1096 = vmatprep.mubr.msk.f32.mxu0 %vm1271_vm1, %v1272_v24  ;;  %p1252_p4 = pnand %p1251_p3, %p1245_p0 }
 0x17a   :  { %v1201_v17 = vpop.eup %1200 }
 0x17b   :  { %193 = vrot.lane.b32.xlu0 %v1201_v17, %s1269_s3 }
 0x17f   :  { %285 = vrot.lane.b32.xlu0 %v989_v12, %s1268_s29 }
 0x1ed   :  { %v194_v26 = vpop.permute.xlu0 %193 }
 0x1ee   :  { %v196_v27 = vmul.f32 %v1199_v13, %v194_v26 }
 0x1f0   :  { %198 = vrot.lane.b32.xlu1 %v196_v27, %s1273_s2 }
 0x1f1   :  { %v1371_v31 = vpop.permute.xlu0 %285 }
 0x243   :  { %v1427_v16 = vpop.f32.mrb[4].mxu0 }
 0x244   :  { %v155_v8 = vadd.f32 %v1427_v16, %v1322_v5 }
 0x262   :  { %v199_v28 = vpop.permute.xlu1 %198 }
 0x263   :  { %v201_v29 = vsub.f32 %v1201_v17, %v199_v28  ;;  %v149_v17 = vpop.f32.mrb[5].mxu0  ;;  %v145_v28 = vadd.f32 %v1059_v53, %v1322_v5 }
 0x264   :  { %v1429_v18 = vpop.f32.mrb[6].mxu0 }
 0x265   :  { %203 = vrot.lane.b32.xlu1 %v201_v29, %s1268_s29  ;;  %v1431_v19 = vpop.f32.mrb[7].mxu0 }
 0x2d7   :  { %v1361_v30 = vpop.permute.xlu1 %203 }
 0x2d8   :  { %1075 = vmatmul.mubr.msk.f32.vlgmr.msra.gmra.mrb[0].mxu1 %vm205_vm2, %v1361_v30 }
 0x2d9   :  { %1155 = vmatpush3.bf16.msra.mxu1 %v1341_v22  ;;  %1085 = vmatprep.mubr.msk.f32.mxu1 %vm1271_vm1, %v1272_v24 }
 0x2da   :  { %1156 = vmatprep.subr.bf16.mxu1 %v1270_v21 }
 0x2dd   :  { %1158 = vmatpush3.bf16.msra.mxu1 %v1350_v25 }
 0x2de   :  { %1165 = vmatprep.subr.bf16.mxu1 %v1270_v21 }
 0x3ab   :  { %v274_v32 = vpop.f32.mrb[0].mxu1 }
 0x3ac   :  { %v1076_v33 = vpop.f32.mrb[1].mxu1  ;;  %v288_v34 = vadd.f32 %v1371_v31, %v274_v32  ;;  %v278_v36 = vadd.f32 %v274_v32, %v135_v35 }
 0x3ae   :  { %290 = vrot.lane.b32.xlu1 %v288_v34, %s1268_s29  ;;  %v992_v37 = vmul.f32 -1.442695, %v278_v36 }
 0x3b0   :  { %1202 = vpow2.f32 %v992_v37 }
 0x3ba   :  { %v1203_v38 = vpop.eup %1202 }
 0x3bb   :  { %v282_v39 = vadd.f32 1.0, %v1203_v38 }
 0x3bd   :  { %1204 = vrcp.f32 %v282_v39 }
 0x3c7   :  { %v1205_v40 = vpop.eup %1204 }
 0x420   :  { %v291_v41 = vpop.permute.xlu1 %290 }
 0x421   :  { %v293_v42 = vmul.f32 %v1205_v40, %v291_v41 }
 0x423   :  { %295 = vrot.lane.b32.xlu0 %v293_v42, %s1268_s29 }
 0x495   :  { %v296_v43 = vpop.permute.xlu0 %295 }
 0x496   :  { %v298_v44 = vadd.f32 %v296_v43, %v135_v35 }
 0x498   :  { %1206 = vtanh.f32 %v298_v44 }
 0x4a2   :  { %v1207_v45 = vpop.eup %1206 }
 0x4a3   :  { %v300_v46 = vsub.f32 %v201_v29, %v1207_v45 }
 0x4a5   :  { %302 = vrot.lane.b32.xlu1 %v300_v46, %s1269_s3 }
 0x517   :  { %v303_v49 = vpop.permute.xlu1 %302 }
 0x518   :  { %v305_v50 = vmul.f32 %v1205_v40, %v303_v49 }
 0x51a   :  { %307 = vrot.lane.b32.xlu0 %v305_v50, %s1273_s2  ;;  %v150_v50 = vadd.f32 %v1322_v5, %v149_v17 }
 0x58c   :  { %v308_v51 = vpop.permute.xlu0 %307 }
 0x58d   :  { %v1387_v52 = vadd.f32 %v1207_v45, %v308_v51 }
 0x58f   :  { %312 = vrot.lane.b32.xlu1 %v1387_v52, %s1268_s29 }
 0x601   :  { %v313_v55 = vpop.permute.xlu1 %312 }
 0x602   :  { %1086 = vmatmul.mubr.msk.f32.vlgmr.msra.gmra.mrb[2].mxu1 %vm205_vm2, %v313_v55 }
 0x603   :  { %1167 = vmatpush3.bf16.msra.mxu1 %v1341_v22  ;;  %1107 = vmatprep.mubr.msk.f32.mxu1 %vm1271_vm1, %v1272_v24 }
 0x604   :  { %1168 = vmatprep.subr.bf16.mxu1 %v1270_v21 }
 0x607   :  { %1170 = vmatpush3.bf16.msra.mxu1 %v1350_v25 }
 0x608   :  { %1177 = vmatprep.subr.bf16.mxu1 %v1270_v21 }
 0x6d5   :  { %v382_v56 = vpop.f32.mrb[2].mxu1 }
 0x6d6   :  { %v393_v57 = vadd.f32 %v382_v56, %v1371_v31  ;;  %v1087_v58 = vpop.f32.mrb[3].mxu1  ;;  %v386_v60 = vadd.f32 %v382_v56, %v140_v59 }
 0x6d8   :  { %395 = vrot.lane.b32.xlu0 %v393_v57, %s1268_s29  ;;  %v994_v61 = vmul.f32 -1.442695, %v386_v60 }
 0x6da   :  { %1208 = vpow2.f32 %v994_v61 }
 0x6e4   :  { %v1209_v62 = vpop.eup %1208 }
 0x6e5   :  { %v390_v63 = vadd.f32 1.0, %v1209_v62 }
 0x6e7   :  { %1210 = vrcp.f32 %v390_v63 }
 0x6f1   :  { %v1211_v0 = vpop.eup %1210 }
 0x74a   :  { %v396_v1 = vpop.permute.xlu0 %395 }
 0x74b   :  { %v398_v2 = vmul.f32 %v1211_v0, %v396_v1 }
 0x74d   :  { %400 = vrot.lane.b32.xlu1 %v398_v2, %s1268_s29 }
 0x7bf   :  { %v401_v3 = vpop.permute.xlu1 %400 }
 0x7c0   :  { %v403_v4 = vadd.f32 %v401_v3, %v140_v59 }
 0x7c2   :  { %1212 = vtanh.f32 %v403_v4 }
 0x7cc   :  { %v1213_v6 = vpop.eup %1212 }
 0x7cd   :  { %v405_v7 = vsub.f32 %v1387_v52, %v1213_v6 }
 0x7cf   :  { %407 = vrot.lane.b32.xlu0 %v405_v7, %s1269_s3 }
 0x841   :  { %v408_v12 = vpop.permute.xlu0 %407 }
 0x842   :  { %v410_v13 = vmul.f32 %v1211_v0, %v408_v12 }
 0x844   :  { %412 = vrot.lane.b32.xlu1 %v410_v13, %s1273_s2 }
 0x8b6   :  { %v413_v14 = vpop.permute.xlu1 %412 }
 0x8b7   :  { %v1423_v15 = vadd.f32 %v1213_v6, %v413_v14 }
 0x8b9   :  { %417 = vrot.lane.b32.xlu0 %v1423_v15, %s1268_s29 }
 0x92b   :  { %v418_v20 = vpop.permute.xlu0 %417 }
 0x92c   :  { %1097 = vmatmul.mubr.msk.f32.vlgmr.msra.gmra.mrb[8].mxu0 %vm205_vm2, %v418_v20 }
 0x92d   :  { %1173 = vmatpush3.bf16.msra.mxu0 %v1341_v22  ;;  %1118 = vmatprep.mubr.msk.f32.mxu0 %vm1271_vm1, %v1272_v24 }
 0x92e   :  { %1174 = vmatprep.subr.bf16.mxu0 %v1270_v21 }
 0x931   :  { %1176 = vmatpush3.bf16.msra.mxu0 %v1350_v25 }
 0x932   :  { %1183 = vmatprep.subr.bf16.mxu0 %v1270_v21 }
 0x9ff   :  { %v487_v23 = vpop.f32.mrb[8].mxu0 }
 0xa00   :  { %v498_v26 = vadd.f32 %v487_v23, %v1371_v31  ;;  %v1098_v27 = vpop.f32.mrb[9].mxu0  ;;  %v491_v29 = vadd.f32 %v487_v23, %v145_v28 }
 0xa02   :  { %500 = vrot.lane.b32.xlu1 %v498_v26, %s1268_s29  ;;  %v996_v32 = vmul.f32 -1.442695, %v491_v29 }
 0xa04   :  { %1214 = vpow2.f32 %v996_v32 }
 0xa0e   :  { %v1215_v33 = vpop.eup %1214 }
 0xa0f   :  { %v495_v34 = vadd.f32 1.0, %v1215_v33  ;;  %v160_v33 = vadd.f32 %v1322_v5, %v1431_v19 }
 0xa11   :  { %1216 = vrcp.f32 %v495_v34 }
 0xa1b   :  { %v1217_v35 = vpop.eup %1216 }
 0xa74   :  { %v501_v36 = vpop.permute.xlu1 %500 }
 0xa75   :  { %v503_v37 = vmul.f32 %v1217_v35, %v501_v36 }
 0xa77   :  { %505 = vrot.lane.b32.xlu0 %v503_v37, %s1268_s29 }
 0xae9   :  { %v506_v38 = vpop.permute.xlu0 %505 }
 0xaea   :  { %v508_v39 = vadd.f32 %v506_v38, %v145_v28 }
 0xaec   :  { %1218 = vtanh.f32 %v508_v39 }
 0xaf6   :  { %v1219_v40 = vpop.eup %1218 }
 0xaf7   :  { %v510_v41 = vsub.f32 %v1423_v15, %v1219_v40 }
 0xaf9   :  { %512 = vrot.lane.b32.xlu1 %v510_v41, %s1269_s3 }
 0xb6b   :  { %v513_v42 = vpop.permute.xlu1 %512 }
 0xb6c   :  { %v515_v43 = vmul.f32 %v1217_v35, %v513_v42 }
 0xb6e   :  { %517 = vrot.lane.b32.xlu0 %v515_v43, %s1273_s2 }
 0xbe0   :  { %v518_v44 = vpop.permute.xlu0 %517 }
 0xbe1   :  { %v1447_v45 = vadd.f32 %v1219_v40, %v518_v44 }
 0xbe3   :  { %522 = vrot.lane.b32.xlu1 %v1447_v45, %s1268_s29 }
 0xc55   :  { %v523_v46 = vpop.permute.xlu1 %522 }
 0xc56   :  { %1108 = vmatmul.mubr.msk.f32.vlgmr.msra.gmra.mrb[4].mxu1 %vm205_vm2, %v523_v46 }
 0xc57   :  { %1179 = vmatpush3.bf16.msra.mxu1 %v1341_v22  ;;  %1129 = vmatprep.mubr.msk.f32.mxu1 %vm1271_vm1, %v1272_v24 }
 0xc58   :  { %1180 = vmatprep.subr.bf16.mxu1 %v1270_v21 }
 0xc5b   :  { %1182 = vmatpush3.bf16.msra.mxu1 %v1350_v25 }
 0xd29   :  { %v592_v47 = vpop.f32.mrb[4].mxu1 }
 0xd2a   :  { %v603_v48 = vadd.f32 %v592_v47, %v1371_v31  ;;  %v1109_v49 = vpop.f32.mrb[5].mxu1  ;;  %v596_v51 = vadd.f32 %v592_v47, %v150_v50 }
 0xd2c   :  { %605 = vrot.lane.b32.xlu0 %v603_v48, %s1268_s29  ;;  %v998_v53 = vmul.f32 -1.442695, %v596_v51 }
 0xd2e   :  { %1220 = vpow2.f32 %v998_v53 }
 0xd38   :  { %v1221_v54 = vpop.eup %1220 }
 0xd39   :  { %v600_v55 = vadd.f32 1.0, %v1221_v54  ;;  %v165_v54 = vadd.f32 %v1429_v18, %v1322_v5 }
 0xd3b   :  { %1222 = vrcp.f32 %v600_v55 }
 0xd45   :  { %v1223_v56 = vpop.eup %1222 }
 0xd9e   :  { %v606_v57 = vpop.permute.xlu0 %605 }
 0xd9f   :  { %v608_v58 = vmul.f32 %v1223_v56, %v606_v57 }
 0xda1   :  { %610 = vrot.lane.b32.xlu1 %v608_v58, %s1268_s29 }
 0xe13   :  { %v611_v59 = vpop.permute.xlu1 %610 }
 0xe14   :  { %v613_v60 = vadd.f32 %v611_v59, %v150_v50 }
 0xe16   :  { %1224 = vtanh.f32 %v613_v60 }
 0xe20   :  { %v1225_v61 = vpop.eup %1224 }
 0xe21   :  { %v615_v62 = vsub.f32 %v1447_v45, %v1225_v61 }
 0xe23   :  { %617 = vrot.lane.b32.xlu0 %v615_v62, %s1269_s3 }
 0xe95   :  { %v618_v63 = vpop.permute.xlu0 %617 }
 0xe96   :  { %v620_v0 = vmul.f32 %v1223_v56, %v618_v63 }
 0xe98   :  { %622 = vrot.lane.b32.xlu1 %v620_v0, %s1273_s2 }
 0xf0a   :  { %v623_v1 = vpop.permute.xlu1 %622 }
 0xf0b   :  { %v625_v2 = vadd.f32 %v1225_v61, %v623_v1 }
 0xf0d   :  { %627 = vrot.lane.b32.xlu0 %v625_v2, %s1268_s29 }
 0xf7f   :  { %v1465_v3 = vpop.permute.xlu0 %627 }
 0xf80   :  { %1119 = vmatmul.mubr.msk.f32.vlgmr.msra.gmra.mrb[10].mxu0 %vm205_vm2, %v1465_v3 }
 0xf81   :  { %1185 = vmatpush3.bf16.msra.mxu0 %v1341_v22  ;;  %1140 = vmatprep.mubr.msk.f32.mxu0 %vm1271_vm1, %v1272_v24 }
 0xf82   :  { %1186 = vmatprep.subr.bf16.mxu0 %v1270_v21 }
 0xf85   :  { %1188 = vmatpush3.bf16.msra.mxu0 %v1350_v25 }
0x1053   :  { %v697_v4 = vpop.f32.mrb[10].mxu0 }
0x1054   :  { %v708_v6 = vadd.f32 %v697_v4, %v1371_v31  ;;  %v1120_v7 = vpop.f32.mrb[11].mxu0  ;;  %v701_v9 = vadd.f32 %v697_v4, %v155_v8 }
0x1056   :  { %710 = vrot.lane.b32.xlu1 %v708_v6, %s1268_s29  ;;  %v1000_v10 = vmul.f32 -1.442695, %v701_v9 }
0x1058   :  { %1226 = vpow2.f32 %v1000_v10 }
0x1062   :  { %v1227_v22 = vpop.eup %1226 }
0x1063   :  { %v705_v11 = vadd.f32 1.0, %v1227_v22 }
0x1065   :  { %1228 = vrcp.f32 %v705_v11 }
0x106f   :  { %v1229_v24 = vpop.eup %1228 }
0x10c8   :  { %v711_v12 = vpop.permute.xlu1 %710 }
0x10c9   :  { %v713_v21 = vmul.f32 %v1229_v24, %v711_v12 }
0x10cb   :  { %715 = vrot.lane.b32.xlu0 %v713_v21, %s1268_s29 }
0x113d   :  { %v716_v25 = vpop.permute.xlu0 %715 }
0x113e   :  { %v718_v13 = vadd.f32 %v716_v25, %v155_v8 }
0x1140   :  { %1230 = vtanh.f32 %v718_v13 }
0x114a   :  { %v1231_v14 = vpop.eup %1230 }
0x114b   :  { %v720_v17 = vsub.f32 %v625_v2, %v1231_v14 }
0x114d   :  { %722 = vrot.lane.b32.xlu1 %v720_v17, %s1269_s3 }
0x11bf   :  { %v723_v20 = vpop.permute.xlu1 %722 }
0x11c0   :  { %v725_v16 = vmul.f32 %v1229_v24, %v723_v20 }
0x11c2   :  { %727 = vrot.lane.b32.xlu0 %v725_v16, %s1273_s2 }
0x1234   :  { %v728_v23 = vpop.permute.xlu0 %727 }
0x1235   :  { %v730_v26 = vadd.f32 %v1231_v14, %v728_v23 }
0x1237   :  { %732 = vrot.lane.b32.xlu1 %v730_v26, %s1268_s29 }
0x12a9   :  { %v733_v27 = vpop.permute.xlu1 %732 }
0x12aa   :  { %1130 = vmatmul.mubr.msk.f32.vlgmr.msra.gmra.mrb[6].mxu1 %vm205_vm2, %v733_v27 }
0x137d   :  { %v802_v28 = vpop.f32.mrb[6].mxu1 }
0x137e   :  { %v813_v29 = vadd.f32 %v802_v28, %v1371_v31  ;;  %v1131_v32 = vpop.f32.mrb[7].mxu1  ;;  %v806_v34 = vadd.f32 %v802_v28, %v160_v33 }
0x1380   :  { %815 = vrot.lane.b32.xlu0 %v813_v29, %s1268_s29  ;;  %v1002_v35 = vmul.f32 -1.442695, %v806_v34 }
0x1382   :  { %1232 = vpow2.f32 %v1002_v35 }
0x138c   :  { %v1233_v36 = vpop.eup %1232 }
0x138d   :  { %v810_v37 = vadd.f32 1.0, %v1233_v36 }
0x138f   :  { %1234 = vrcp.f32 %v810_v37 }
0x1399   :  { %v1235_v38 = vpop.eup %1234 }
0x13f2   :  { %v816_v39 = vpop.permute.xlu0 %815 }
0x13f3   :  { %v818_v40 = vmul.f32 %v1235_v38, %v816_v39 }
0x13f5   :  { %820 = vrot.lane.b32.xlu1 %v818_v40, %s1268_s29 }
0x1467   :  { %v821_v41 = vpop.permute.xlu1 %820 }
0x1468   :  { %v823_v42 = vadd.f32 %v821_v41, %v160_v33 }
0x146a   :  { %1236 = vtanh.f32 %v823_v42 }
0x1474   :  { %v1237_v43 = vpop.eup %1236 }
0x1475   :  { %v825_v44 = vsub.f32 %v730_v26, %v1237_v43 }
0x1477   :  { %827 = vrot.lane.b32.xlu0 %v825_v44, %s1269_s3 }
0x14e9   :  { %v828_v46 = vpop.permute.xlu0 %827 }
0x14ea   :  { %v830_v19 = vmul.f32 %v1235_v38, %v828_v46 }
0x14ec   :  { %832 = vrot.lane.b32.xlu1 %v830_v19, %s1273_s2 }
0x155e   :  { %v833_v47 = vpop.permute.xlu1 %832 }
0x155f   :  { %v835_v48 = vadd.f32 %v1237_v43, %v833_v47 }
0x1561   :  { %837 = vrot.lane.b32.xlu0 %v835_v48, %s1268_s29 }
0x15d3   :  { %v838_v49 = vpop.permute.xlu0 %837 }
0x15d4   :  { %1141 = vmatmul.mubr.msk.f32.vlgmr.msra.gmra.mrb[12].mxu0 %vm205_vm2, %v838_v49 }
0x16a7   :  { %v907_v50 = vpop.f32.mrb[12].mxu0 }
0x16a8   :  { %v918_v51 = vadd.f32 %v907_v50, %v1371_v31  ;;  %v1142_v53 = vpop.f32.mrb[13].mxu0  ;;  %v911_v55 = vadd.f32 %v907_v50, %v165_v54 }
0x16aa   :  { %920 = vrot.lane.b32.xlu1 %v918_v51, %s1268_s29  ;;  %v1004_v56 = vmul.f32 -1.442695, %v911_v55 }
0x16ac   :  { %1238 = vpow2.f32 %v1004_v56 }
0x16b6   :  { %v1239_v57 = vpop.eup %1238 }
0x16b7   :  { %v915_v58 = vadd.f32 1.0, %v1239_v57 }
0x16b9   :  { %1240 = vrcp.f32 %v915_v58 }
0x16c3   :  { %v1241_v59 = vpop.eup %1240 }
0x171c   :  { %v921_v60 = vpop.permute.xlu1 %920 }
0x171d   :  { %v923_v61 = vmul.f32 %v1241_v59, %v921_v60 }
0x171f   :  { %925 = vrot.lane.b32.xlu0 %v923_v61, %s1268_s29 }
0x1791   :  { %v926_v62 = vpop.permute.xlu0 %925 }
0x1792   :  { %v928_v63 = vadd.f32 %v926_v62, %v165_v54 }
0x1794   :  { %1242 = vtanh.f32 %v928_v63 }
0x179e   :  { %v1243_v31 = vpop.eup %1242 }
0x179f   :  { %v930_v0 = vsub.f32 %v835_v48, %v1243_v31 }
0x17a1   :  { %932 = vrot.lane.b32.xlu1 %v930_v0, %s1269_s3 }
0x17a5   :  { %942 = vrot.lane.b32.xlu1 %v1387_v52, %s1269_s3 }
0x17a9   :  { %945 = vrot.lane.b32.xlu1 %v1447_v45, %s1273_s2 }
0x1813   :  { %v933_v5 = vpop.permute.xlu1 %932 }
0x1814   :  { %v935_v18 = vmul.f32 %v1241_v59, %v933_v5 }
0x1816   :  { %937 = vrot.lane.b32.xlu0 %v935_v18, %s1273_s2 }
0x1817   :  { %v943_v1 = vpop.permute.xlu1 %942 }
0x1818   :  { %v956_v2 = vsel %vm205_vm2, %v1361_v30, %v943_v1 }
0x1819   :  { %v958_v4 = vsel %vm957_vm3, %v956_v2, %v1423_v15 }
0x181a   :  { %949 = vrot.lane.b32.xlu0 %v730_v26, %s1269_s3 }
0x181b   :  { %v946_v6 = vpop.permute.xlu1 %945 }
0x181c   :  { %v960_v52 = vsel %vm959_vm4, %v958_v4, %v946_v6 }
0x181d   :  { %964 = vst [vmem:[#allocation2] sm:$0xff] %v960_v52 }
0x1888   :  { %v938_v7 = vpop.permute.xlu0 %937 }
0x1889   :  { %v940_v45 = vadd.f32 %v1243_v31, %v938_v7 }
0x188b   :  { %953 = vrot.lane.b32.xlu0 %v940_v45, %s1273_s2 }
0x188c   :  { %v950_v8 = vpop.permute.xlu0 %949 }
0x188d   :  { %v961_v9 = vsel %vm205_vm2, %v1465_v3, %v950_v8 }
0x188e   :  { %v962_v30 = vsel %vm957_vm3, %v961_v9, %v835_v48 }
0x18fd   :  { %v954_v10 = vpop.permute.xlu0 %953 }
0x18fe   :  { %v963_v22 = vsel %vm959_vm4, %v962_v30, %v954_v10 }
0x18ff   :  { %965 = vst [vmem:[#allocation2 + $0x8] sm:$0xff] %v963_v22 }
0x1900   :  { %1255 = shalt.err (!%p1252_p4)
}
0x1901   :  { %s1256_s1 = scalar_lea.hbm %s1529_s5, 256 }
0x1902   :  { %p1257_p5 = scmp.ne.s32.totalorder %s1529_s5, %s1256_s1  ;;  %p1260_p6 = scmp.lt.u32.totalorder %s1256_s1, %s1529_s5 }
0x1904   :  { %p1262_p7 = pnand %p1260_p6, %p1257_p5 }
0x1906   :  { %1265 = shalt.err (!%p1262_p7)
}
0x1907   :  { %975 = dma.vmem_to_hbm [thread:$0]  %s973_s24, 256, %s1529_s5, [#allocation3]  }
0x1908   :  { %1266 = dma.done.wait [#allocation3], 256  }
0x1909   :  { %1267 = vsyncadd [#allocation3], 4294967040 }
0x190a   :  { %979 = vsyncpa [#allocation3], 1 }

</bundles_post_ra>
